<compile_context>
chip_gen: v7x
topology: tpu7x:2x2x1
jax: 0.10.0
libtpu: 0.0.40
codegen_flags: <defaults>
</compile_context>

<pallas_src>
import functools

import jax
import jax.numpy as jnp
from jax.experimental import pallas as pl
from jax.experimental.pallas import tpu as pltpu

N_BINS = 15
_LANES = 128


def _round_up(x, m):
    return ((x + m - 1) // m) * m


def _inv_temp(temperature):
    """1 / clamp(T, 1e-6) as a (1,) f32 array for scalar prefetch."""
    t = jnp.maximum(jnp.asarray(temperature, jnp.float32), jnp.float32(1e-6))
    return jnp.reshape(1.0 / t, (1,))


# --------------------------------------------------------------------------------------
# temperature_scale: logits * (1 / clamp(T, 1e-6)), lane-dense layout
# --------------------------------------------------------------------------------------
def _temp_scale_kernel(inv_t_ref, x_ref, out_ref):
    inv_t = inv_t_ref[0]                                   # SMEM scalar (prefetched)
    out_ref[...] = (x_ref[...].astype(jnp.float32) * inv_t).astype(out_ref.dtype)


def temperature_scale(logits, temperature, *, max_rows=2048):
    """logits: (N, C) any float dtype -> (N, C) same dtype, scaled by 1/clamp(T,1e-6)."""
    n, c = logits.shape
    inv_t = _inv_temp(temperature)

    # Flatten to a lane-dense (rows, 128) slab (pure metadata reshape when no pad needed).
    total = n * c
    rows = pl.cdiv(total, _LANES)
    rows_pad = _round_up(max(rows, 16), 16)
    flat = logits.reshape(-1)
    pad_len = rows_pad * _LANES - total
    if pad_len:
        flat = jnp.pad(flat, (0, pad_len))
    x2d = flat.reshape(rows_pad, _LANES)

    tile_rows = min(max_rows, rows_pad)
    if rows_pad >= 32:
        # keep >= 2 grid blocks so both v7x TensorCores get work from the parallel axis
        tile_rows = min(tile_rows, _round_up(pl.cdiv(rows_pad, 2), 16))
    nb = pl.cdiv(rows_pad, tile_rows)

    out2d = pl.pallas_call(
        _temp_scale_kernel,
        out_shape=jax.ShapeDtypeStruct((rows_pad, _LANES), logits.dtype),
        grid_spec=pltpu.PrefetchScalarGridSpec(
            num_scalar_prefetch=1,
            grid=(nb,),
            in_specs=[pl.BlockSpec((tile_rows, _LANES), lambda i, t: (i, 0))],
            out_specs=pl.BlockSpec((tile_rows, _LANES), lambda i, t: (i, 0)),
        ),
        compiler_params=pltpu.CompilerParams(
            dimension_semantics=("parallel",),
            vmem_limit_bytes=32 * 1024 * 1024),
    )(inv_t, x2d)

    return out2d.reshape(-1)[:total].reshape(n, c)


# --------------------------------------------------------------------------------------
# Fused temperature-scaling + _ECELoss: per-tile partial bin sums, tiny JAX combine
# --------------------------------------------------------------------------------------
def _ece_fused_kernel(inv_t_ref, logits_ref, labels_ref, part_ref, *, n_total, n_bins):
    i = pl.program_id(0)
    inv_t = inv_t_ref[0]                                    # SMEM scalar (prefetched)
    x = logits_ref[...].astype(jnp.float32)                 # (tile, C), raw logits
    tile, num_classes = x.shape

    # confidence of the temperature-scaled softmax without materializing it:
    #   conf = max softmax(x/T) = 1 / sum_j exp((x_j - x_max) * (1/T))     (1/T > 0)
    m = jnp.max(x, axis=1, keepdims=True)                   # (tile, 1)
    s = jnp.sum(jnp.exp((x - m) * inv_t), axis=1, keepdims=True)
    conf = 1.0 / s                                          # (tile, 1)

    # predictions: first index achieving the max (torch.max tie semantics);
    # positive temperature scaling does not change the argmax.
    col = jax.lax.broadcasted_iota(jnp.int32, x.shape, 1)
    pred = jnp.min(jnp.where(x == m, col, num_classes), axis=1, keepdims=True)
    acc = (pred == labels_ref[...]).astype(jnp.float32)     # (tile, 1)

    # mask out-of-range rows of the (possibly padded) last tile BEFORE any reduction
    # (padded-block garbage can produce NaN through exp; masked rows contribute 0).
    row = jax.lax.broadcasted_iota(jnp.int32, (tile, 1), 0) + i * tile
    valid = row < n_total
    conf = jnp.where(valid, conf, 0.0)
    acc = jnp.where(valid, acc, 0.0)

    # bin index: bin b covers (b/n_bins, (b+1)/n_bins]  ->  b = ceil(conf*n_bins) - 1
    b = jnp.clip(jnp.ceil(conf * jnp.float32(n_bins)).astype(jnp.int32) - 1, 0, n_bins - 1)
    lane = jax.lax.broadcasted_iota(jnp.int32, (tile, _LANES), 1)
    in_bin = jnp.where(valid & (b == lane), 1.0, 0.0).astype(jnp.float32)   # (tile, 128)

    # direct lane-dense row stores (no concatenate / zero-fill temporary)
    part_ref[0, 0:1, :] = jnp.sum(in_bin, axis=0, keepdims=True)            # counts
    part_ref[0, 1:2, :] = jnp.sum(in_bin * conf, axis=0, keepdims=True)     # sum conf
    part_ref[0, 2:3, :] = jnp.sum(in_bin * acc, axis=0, keepdims=True)      # sum acc


def _choose_tile(n, c, itemsize, *, max_tile=1024, budget_bytes=20 * 1024 * 1024,
                 min_tile=16, split=2):
    """Row tile for the ECE kernel.

    Accounts for the double-buffered logits block, the in-kernel f32 upcast/exp temps and
    the (tile,128) one-hot; v7x-safe under a 32 MiB scoped VMEM limit while still hitting
    the HBM roofline tile sizes (512-1024 rows) on v5e/v6e for wide-C inputs. Capped so
    there are >= `split` grid blocks (keeps both v7x TensorCores busy on small N).
    """
    per_row = 2 * c * itemsize + 2 * c * 4 + _LANES * 4 + 64
    t = budget_bytes // max(per_row, 1)
    t = min(t, max_tile)
    if n > 2 * min_tile:
        t = min(t, _round_up(pl.cdiv(n, split), min_tile))
    t = min(t, _round_up(n, min_tile))
    t = max(min_tile, (t // min_tile) * min_tile)
    return int(t)


def ece_loss(logits, labels, temperature=1.0, *, n_bins=N_BINS, tile=None):
    """ECE of temperature_scale(logits) computed in one pass over the raw logits.

    logits: (N, C) any float dtype (streamed in native dtype, upcast in-kernel),
    labels: (N,) int, temperature: scalar -> (1,) float32 ECE.
    """
    n, c = logits.shape
    if tile is None:
        tile = _choose_tile(n, c, jnp.dtype(logits.dtype).itemsize)
    nb = pl.cdiv(n, tile)
    labels2d = labels.reshape(n, 1).astype(jnp.int32)
    inv_t = _inv_temp(temperature)

    kernel = functools.partial(_ece_fused_kernel, n_total=n, n_bins=n_bins)
    partials = pl.pallas_call(
        kernel,
        out_shape=jax.ShapeDtypeStruct((nb, 8, _LANES), jnp.float32),
        grid_spec=pltpu.PrefetchScalarGridSpec(
            num_scalar_prefetch=1,
            grid=(nb,),
            in_specs=[
                pl.BlockSpec((tile, c), lambda i, t: (i, 0)),
                pl.BlockSpec((tile, 1), lambda i, t: (i, 0)),
            ],
            out_specs=pl.BlockSpec((1, 8, _LANES), lambda i, t: (i, 0, 0)),
        ),
        compiler_params=pltpu.CompilerParams(
            dimension_semantics=("parallel",),
            vmem_limit_bytes=32 * 1024 * 1024),
    )(inv_t, logits, labels2d)

    # tiny epilogue: combine per-tile partials (only the 3 written rows) + ECE formula
    cnt = jnp.sum(partials[:, 0, :n_bins], axis=0)
    conf_sum = jnp.sum(partials[:, 1, :n_bins], axis=0)
    acc_sum = jnp.sum(partials[:, 2, :n_bins], axis=0)
    safe = jnp.maximum(cnt, 1.0)
    prop = cnt / jnp.float32(n)
    term = jnp.where(cnt > 0.0, jnp.abs(conf_sum / safe - acc_sum / safe) * prop, 0.0)
    return jnp.sum(term).reshape(1)                         # matches torch.zeros(1) shape


# --------------------------------------------------------------------------------------
# Pure-JAX references mirroring the PyTorch module
# --------------------------------------------------------------------------------------
def _ece_ref(logits, labels, temperature, n_bins=N_BINS):
    t = jnp.maximum(jnp.float32(temperature), 1e-6)
    scaled = logits.astype(jnp.float32) / t                 # f32 pipeline (fused semantics)
    sm = jax.nn.softmax(scaled, axis=1)
    conf = jnp.max(sm, axis=1)
    pred = jnp.argmax(sm, axis=1)
    acc = (pred == labels).astype(jnp.float32)
    ece = jnp.zeros((1,), jnp.float32)
    bounds = jnp.linspace(0.0, 1.0, n_bins + 1)
    for i in range(n_bins):
        in_bin = (conf > bounds[i]) & (conf <= bounds[i + 1])
        cnt = jnp.sum(in_bin.astype(jnp.float32))
        prop = cnt / logits.shape[0]
        acc_in = jnp.sum(jnp.where(in_bin, acc, 0.0)) / jnp.maximum(cnt, 1.0)
        conf_in = jnp.sum(jnp.where(in_bin, conf, 0.0)) / jnp.maximum(cnt, 1.0)
        ece = ece + jnp.where(cnt > 0, jnp.abs(conf_in - acc_in) * prop, 0.0)
    return ece


def _scale_ref(logits, temperature):
    t = jnp.maximum(jnp.float32(temperature), 1e-6)
    return (logits.astype(jnp.float32) / t).astype(logits.dtype)


if __name__ == "__main__":
    key = jax.random.PRNGKey(0)
    temperature = 1.5
    k1, k2, k3, k4 = jax.random.split(key, 4)

    # Case 1: f32 logits, N not a multiple of the tile (exercises in-kernel row masking).
    n1, c1 = 300, 10
    logits1 = jax.random.normal(k1, (n1, c1), dtype=jnp.float32) * 2.0
    labels1 = jax.random.randint(k2, (n1,), 0, c1, dtype=jnp.int32)

    scaled1 = temperature_scale(logits1, temperature)
    jax.block_until_ready(scaled1)
    assert jnp.allclose(scaled1, _scale_ref(logits1, temperature), rtol=1e-5, atol=1e-5), \
        "temperature_scale (f32) mismatch"

    ece1 = ece_loss(logits1, labels1, temperature)          # fused scale + ECE ("after")
    jax.block_until_ready(ece1)
    ref1 = _ece_ref(logits1, labels1, temperature)
    assert jnp.allclose(ece1, ref1, atol=1e-4), (ece1, ref1)

    ece1b = ece_loss(logits1, labels1, 1.0)                 # unscaled ECE ("before")
    ref1b = _ece_ref(logits1, labels1, 1.0)
    assert jnp.allclose(ece1b, ref1b, atol=1e-4), (ece1b, ref1b)

    # Case 2: native bf16 logits streamed (kernel upcasts; no HBM round trip of scaled logits).
    n2, c2 = 1500, 12
    logits2 = (jax.random.normal(k3, (n2, c2), dtype=jnp.float32) * 2.0).astype(jnp.bfloat16)
    labels2 = jax.random.randint(k4, (n2,), 0, c2, dtype=jnp.int32)

    scaled2 = temperature_scale(logits2, temperature)
    jax.block_until_ready(scaled2)
    assert jnp.allclose(scaled2.astype(jnp.float32),
                        _scale_ref(logits2, temperature).astype(jnp.float32),
                        rtol=2e-2, atol=2e-2), "temperature_scale (bf16) mismatch"

    ece2 = ece_loss(logits2, labels2, temperature)
    jax.block_until_ready(ece2)
    ref2 = _ece_ref(logits2, labels2, temperature)
    assert jnp.allclose(ece2, ref2, atol=1e-4), (ece2, ref2)

    print("KERNEL_OK")
</pallas_src>

<mosaic_0001>
module attributes {stable_mosaic.version = 11 : i64} {
  func.func @_temp_scale_kernel(%arg0: i32, %arg1: memref<1xf32, #tpu.memory_space<smem>>, %arg2: memref<16x128xf32, #tpu.memory_space<vmem>>, %arg3: memref<16x128xf32, #tpu.memory_space<vmem>>) attributes {dimension_semantics = [#tpu.dimension_semantics<parallel>], iteration_bounds = array<i64: 2>, scalar_prefetch = 1 : i64, scratch_operands = 0 : i64, tpu.core_type = #tpu.core_type<tc>, window_params = [{transform_indices = @transform_0, window_bounds = array<i64: 16, 128>}, {transform_indices = @transform_1, window_bounds = array<i64: 16, 128>}]} {
    %c0 = arith.constant 0 : index
    %0 = memref.load %arg1[%c0] : memref<1xf32, #tpu.memory_space<smem>>
    %c0_0 = arith.constant 0 : index
    %c0_1 = arith.constant 0 : index
    %1 = vector.load %arg2[%c0_0, %c0_1] : memref<16x128xf32, #tpu.memory_space<vmem>>, vector<16x128xf32>
    %2 = vector.broadcast %0 : f32 to vector<16x128xf32>
    %3 = arith.mulf %1, %2 : vector<16x128xf32>
    %c0_2 = arith.constant 0 : index
    %c0_3 = arith.constant 0 : index
    %4 = vector.load %arg3[%c0_2, %c0_3] : memref<16x128xf32, #tpu.memory_space<vmem>>, vector<16x128xf32>
    tpu.vector_store %arg3[%c0_2, %c0_3], %3 {strides = array<i32>} : memref<16x128xf32, #tpu.memory_space<vmem>>, vector<16x128xf32>,
    return
  }
  func.func @transform_0(%arg0: i32, %arg1: memref<1xf32, #tpu.memory_space<smem>>) -> (i32, i32) {
    %c0_i32 = arith.constant 0 : i32
    %c0_i32_0 = arith.constant 0 : i32
    return %arg0, %c0_i32 : i32, i32
  }
  func.func @transform_1(%arg0: i32, %arg1: memref<1xf32, #tpu.memory_space<smem>>) -> (i32, i32) {
    %c0_i32 = arith.constant 0 : i32
    %c0_i32_0 = arith.constant 0 : i32
    return %arg0, %c0_i32 : i32, i32
  }
}

</mosaic_0001>

<bundles_post_ra>
// kernel: tpu_custom_call.1
= control target key start
LH: loop header
LB: loop body
LE: loop exit
PB: predicated region body
PF: predicated region fallthrough
CT: control target
= control target key end

     0   :  { %s584_s0 = inlined_call_operand.<no memory space> [shape: f32[1], index: 0, kind: input, shape index: {}]   ;;  %s585_s1 = inlined_call_operand.hbm [shape: f32[32,128], index: 1, kind: input, shape index: {}]   ;;  %s586_s2 = inlined_call_operand.hbm [shape: f32[32,128], index: 2, kind: output, shape index: {}]  }
   0x1   :  { %7 = sst [smem:[#allocation3]] %s584_s0 }
   0x2   :  { %8 = vsyncpa [#allocation5], 0 }
   0x3   :  { %10 = vsyncpa [#allocation5 + $0x1], 0 }
   0x4   :  { %11 = vsyncpa [#allocation6], 0 }
   0x5   :  { %13 = vsyncpa [#allocation6 + $0x1], 0  ;;  %s422_s11 = smov 0   ;;  %s424_s12 = smov 0  }
   0x6   :  { %s426_s13 = smov 0   ;;  %s428_s14 = smov 0  }
   0x7 LB: > { %s443_s0 = sadd.s32 4294967295, %s396_s14   ;;  %s234_s15 = sadd.s32 4294967294, %s396_s14   ;;  %s396_s14 = sphi %s428_s14, %s599_s14   ;;  %s392_s13 = sphi %s426_s13, %s598_s13   ;;  %s388_s12 = sphi %s424_s12, %s597_s12   ;;  %s384_s11 = sphi %s422_s11, %s596_s11  }
   0x8   : > { %s447_s16 = sadd.s32 1, %s396_s14   ;;  %s26_s17 = sadd.s32 1, %s392_s13 }
   0x9   : > { %s23_s18 = ssub.s32 %s396_s14, %s447_s16  ;;  %p33_p0 = scmp.ne.s32.totalorder %s392_s13, %s388_s12 }
   0xa   : > { %p24_p1 = scmp.eq.s32.totalorder %s23_s18, 0  ;;  %p34_p2 = scmp.eq.s32.totalorder %s396_s14, 0 }
   0xb   : > { %p39_p3 = scmp.ne.s32.totalorder %s388_s12, %s384_s11  ;;  %p40_p4 = scmp.eq.s32.totalorder %s443_s0, 0 }
   0xc   : > { %s459_s19 = scalar_select %p24_p1, %s392_s13, %s26_s17  }
   0xd   : > { %p461_p5 = por %p34_p2, %p33_p0  ;;  %p465_p6 = por %p40_p4, %p39_p3 }
   0xe   : > { %p63_p7 = scmp.eq.s32.totalorder %s443_s0, 1  ;;  %p69_p8 = scmp.eq.s32.totalorder %s234_s15, 1 }
   0xf   : > { %p262_p10 = scmp.lt.s32.totalorder %s396_s14, 2  ;;  %s89_s24 = sand.u32 1, %s392_s13  }
  0x10   : > { %p472_p11 = por %p63_p7, %p33_p0  ;;  %p476_p12 = por %p69_p8, %p39_p3 }
  0x11   : > { %s248_s25 = sshll.u32 %s396_s14, 8  ;;  %s237_s26 = sshll.u32 %s89_s24, 4 }
  0x12   : > { %s590_s22 = scalar_select %p472_p11, 1, 0 }
  0x13   : > { %s591_s23 = scalar_select %p476_p12, 1, 0 }
  0x14   : > { %s485_s29 = scalar_lea.hbm %s585_s1, %s248_s25  ;;  %s93_s30 = scalar_lea.vmem [#allocation4], %s237_s26 }
  0x15   : > { %s100_s3 = sshll.u32 %s93_s30, 4  ;;  %p489_p13 = pnand %p262_p10, %p461_p5  ;;  %s493_s3 = int_to_ptr.vmem [resolvable:$true] %s100_s3 }
  0x16   : > { %s495_s5 = scalar_lea.sflag [#allocation5], %s89_s24  ;;  %s300_s6 = scalar_lea.hbm %s485_s29, 256 }
  0x17   : > { %p301_p0 = scmp.ne.s32.totalorder %s485_s29, %s300_s6  ;;  %p302_p1 = pneg %p489_p13 }
  0x18   : > { %s305_s9 = scalar_lea.hbm %s585_s1, 512  ;;  %p306_p4 = scmp.lt.u32.totalorder %s485_s29, %s585_s1 }
  0x19   : > { %p303_p2 = pnand %p302_p1, %p301_p0  ;;  %p307_p5 = scmp.lt.u32.totalorder %s305_s9, %s300_s6 }
  0x1a   : > { %p309_p8 = scmp.lt.u32.totalorder %s300_s6, %s485_s29 }
  0x1b   : > { %p304_p3 = pneg %p303_p2  ;;  %p308_p7 = por %p307_p5, %p306_p4 }
  0x1d   : > { %p310_p10 = por %p309_p8, %p308_p7 }
  0x1f   : > { %p311_p9 = pnand %p310_p10, %p304_p3 }
  0x21   : > { %314 = shalt.err (!%p311_p9)
}
  0x22   : > { %s315_s17 = scalar_lea.vmem %s493_s3, 256  ;;  %s398_s18 = smov [#allocation4]  }
  0x23   : > { %p316_p0 = scmp.ne.s32.totalorder %s493_s3, %s315_s17  ;;  %s320_s20 = sshll.u32 %s398_s18, 4  ;;  %s321_s20 = int_to_ptr.vmem [resolvable:$false] %s320_s20 }
  0x24   : > { %s322_s24 = scalar_lea.vmem %s321_s20, 512  ;;  %p323_p11 = scmp.lt.s32.totalorder %s493_s3, %s321_s20 }
  0x25   : > { %p318_p2 = pnand %p316_p0, %p302_p1  ;;  %p324_p4 = scmp.lt.s32.totalorder %s322_s24, %s315_s17 }
  0x27   : > { %p319_p12 = pneg %p318_p2  ;;  %p325_p5 = por %p324_p4, %p323_p11 }
  0x29   : > { %p326_p7 = pnand %p325_p5, %p319_p12 }
  0x2b   : > { %329 = shalt.err (!%p326_p7)
}
  0x2c   : > { %s399_s25 = smov 128   ;;  %s400_s26 = smov 8  }
  0x2d   : > { %257 = dma.hbm_to_vmem [thread:$0]  (!%p489_p13), %s485_s29, 256, %s493_s3, %s495_s5, %s399_s25, %s399_s25, %s400_s26  }
  0x2e   : > { %p240_p9 = scmp.ge.s32.totalorder %s396_s14, 1  ;;  %p108_p1 = scmp.lt.s32.totalorder %s396_s14, 3 }
  0x30   : > { %p109_p3 = pnand %p240_p9, %p108_p1 }
  0x31   : > { %s526_s27 = sand.u32 (!%p109_p3), 1, %s388_s12  }
  0x32   : > { %112 = sbr.rel (%p109_p3) target bundleno = 85 (0x55), region = 24  ;;  %s241_s28 = sshll.u32 (!%p109_p3), %s526_s27, 4 }
  0x33   : > { %s115_s30 = scalar_lea.sflag (!%p109_p3), [#allocation5], %s526_s27  ;;  %s118_s6 = scalar_lea.vmem (!%p109_p3), [#allocation4], %s241_s28 }
  0x39   : > { %375 = dma.done.wait (%p465_p6), %s115_s30, 256  }
  0x3a   : > { %377 = vsyncadd (%p465_p6), %s115_s30, 4294967040  ;;  %s139_s29 = sld [smem:[#allocation3]]  ;;  %s136_s3 = scalar_lea.vmem [#allocation7], %s241_s28  ;;  %v140_v0 = vld [vmem:[%s118_s6] sm:$0xff]  ;;  %v141_v2 = vld [vmem:[%s118_s6 + $0x8] sm:$0xff] }
  0x3b   : > { %s161_s4 = sshll.u32 %s136_s3, 4  ;;  %s249_s5 = sshll.u32 %s443_s0, 8  ;;  %s535_s4 = int_to_ptr.vmem [resolvable:$true] %s161_s4 }
  0x3c   : > { %s540_s21 = scalar_lea.hbm %s586_s2, %s249_s5  ;;  %s148_s9 = scalar_lea.sflag [#allocation6], %s526_s27 }
  0x3d   : > { %s330_s10 = scalar_lea.vmem %s535_s4, 256  ;;  %p593_p11 = scmp.ne.s32.totalorder %s590_s22, 0 }
  0x3e   : > { %p331_p6 = scmp.ne.s32.totalorder %s535_s4, %s330_s10  ;;  %s401_s0 = smov [#allocation7]  }
  0x3f   : > { %s334_s15 = sshll.u32 %s401_s0, 4  ;;  %s335_s15 = int_to_ptr.vmem [resolvable:$false] %s334_s15 }
  0x40   : > { %v142_v1 = vstv %s139_s29  ;;  %p332_p12 = pnand %p331_p6, %p593_p11  ;;  %s336_s17 = scalar_lea.vmem %s335_s15, 512 }
  0x41   : > { %v143_v3 = vmul.f32 %v142_v1, %v140_v0  ;;  %v144_v4 = vmul.f32 %v142_v1, %v141_v2  ;;  %p337_p8 = scmp.lt.s32.totalorder %s535_s4, %s335_s15  ;;  %p338_p10 = scmp.lt.s32.totalorder %s336_s17, %s330_s10 }
  0x42   : > { %p333_p13 = pneg %p332_p12 }
  0x43   : > { %145 = vst [vmem:[%s136_s3] sm:$0xff] %v143_v3  ;;  %146 = vst [vmem:[%s136_s3 + $0x8] sm:$0xff] %v144_v4  ;;  %p339_p0 = por %p338_p10, %p337_p8 }
  0x45   : > { %p340_p2 = pnand %p339_p0, %p333_p13 }
  0x47   : > { %343 = shalt.err (!%p340_p2)
}
  0x48   : > { %s344_s18 = scalar_lea.hbm %s540_s21, 256  ;;  %s348_s25 = scalar_lea.hbm %s586_s2, 512 }
  0x49   : > { %p345_p4 = scmp.ne.s32.totalorder %s540_s21, %s344_s18  ;;  %p349_p9 = scmp.lt.u32.totalorder %s540_s21, %s586_s2 }
  0x4a   : > { %p350_p1 = scmp.lt.u32.totalorder %s348_s25, %s344_s18  ;;  %p352_p6 = scmp.lt.u32.totalorder %s344_s18, %s540_s21 }
  0x4b   : > { %p346_p5 = pnand %p345_p4, %p593_p11 }
  0x4c   : > { %p351_p3 = por %p350_p1, %p349_p9 }
  0x4d   : > { %p347_p7 = pneg %p346_p5 }
  0x4e   : > { %p353_p12 = por %p352_p6, %p351_p3 }
  0x50   : > { %p354_p13 = pnand %p353_p12, %p347_p7 }
  0x52   : > { %357 = shalt.err (!%p354_p13)
}
  0x53   : > { %s402_s30 = smov 128   ;;  %s403_s6 = smov 8  }
  0x54   : > { %252 = dma.vmem_to_hbm [thread:$0]  (%p593_p11), %s535_s4, 256, %s540_s21, %s148_s9, %s402_s30, %s402_s30, %s403_s6  }
  0x55 PF: > { %s176_s29 = sand.u32 1, %s384_s11   ;;  %p594_p8 = scmp.ne.s32.totalorder %s591_s23, 0 }
  0x56   : > { %p595_p10 = scmp.ge.s32.totalorder %s396_s14, 2  ;;  %s177_s3 = scalar_lea.sflag [#allocation6], %s176_s29 }
  0x58   : > { %p259_p0 = pnand %p595_p10, %p594_p8 }
  0x5a   : > { %379 = dma.done.wait (!%p259_p0), %s177_s3, 256  }
  0x5b   : > { %381 = vsyncadd (!%p259_p0), %s177_s3, 4294967040  ;;  %p16_p2 = scmp.ge.s32.totalorder %s447_s16, 4   ;;  %s596_s11 = smov %s388_s12 }
  0x5c   : > { %s597_s12 = smov %s392_s13  ;;  %s598_s13 = smov %s459_s19 }
  0x5d   : > { %s599_s14 = smov %s447_s16  ;;  %18 = sbr.rel (!%p16_p2) target bundleno = 7 (0x7), region = 69 }
  0x64   :  { %182 = vsyncpa [#allocation5], 1 }
  0x65   :  { %184 = vsyncpa [#allocation5 + $0x1], 1 }
  0x66   :  { %185 = vsyncpa [#allocation6], 1 }
  0x67   :  { %187 = vsyncpa [#allocation6 + $0x1], 1 }

</bundles_post_ra>
